<compile_context>
chip_gen: v7x
topology: tpu7x:2x2x1
jax: 0.10.0
libtpu: 0.0.40
codegen_flags: <defaults>
</compile_context>

<pallas_src>
import jax
import jax.numpy as jnp
from jax.experimental import pallas as pl
from jax.experimental.pallas import tpu as pltpu


def actor_kernel(obs_ref, act_ref, w1_ref, b1_ref, w2_ref, b2_ref,
                 w3_ref, b3_ref, logits_ref, logp_ref):
    """One batch tile of the actor forward pass.

    Block shapes:
      obs: (TB, D) bf16, act: (TB, 1) i32,
      w1: (D, H1) bf16, b1: (1, H1) f32,
      w2: (H1, H2) bf16, b2: (1, H2) f32,
      w3: (H2, A) bf16, b3: (1, A) f32,
      logits: (TB, A) f32, logp_a: (TB, 1) f32
    """
    # Layer 1: bf16 x bf16 -> f32 accumulate on the MXU.
    h1 = jnp.tanh(
        jnp.dot(obs_ref[...], w1_ref[...], preferred_element_type=jnp.float32)
        + b1_ref[...])

    # Layers 2/3: keep activations in f32 (only HBM-resident tensors are bf16).
    h2 = jnp.tanh(
        jnp.dot(h1, w2_ref[...].astype(jnp.float32),
                preferred_element_type=jnp.float32) + b2_ref[...])

    logits = (jnp.dot(h2, w3_ref[...].astype(jnp.float32),
                      preferred_element_type=jnp.float32) + b3_ref[...])
    logits_ref[...] = logits.astype(logits_ref.dtype)

    # log_softmax + log-prob of the given action via one-hot (VPU + lane
    # reduce; no MXU pass for the N-small gather).
    m = jnp.max(logits, axis=-1, keepdims=True)
    z = logits - m
    lse = jnp.log(jnp.sum(jnp.exp(z), axis=-1, keepdims=True))
    logp = z - lse
    col = jax.lax.broadcasted_iota(jnp.int32, logits.shape, 1)
    onehot = (col == act_ref[...]).astype(jnp.float32)
    logp_ref[...] = jnp.sum(logp * onehot, axis=-1, keepdims=True)


def _round_up(x, m):
    return ((x + m - 1) // m) * m


def mlp_actor_forward(obs, params, act=None, tb_max=512):
    """Runs the Pallas kernel.

    Returns (logits, logp_a) where logits are the Categorical parameters of
    shape (B, act_dim) and logp_a is (B,) (or None if act is None).
    """
    w1, b1, w2, b2, w3, b3 = params
    B, D = obs.shape
    H1 = w1.shape[1]
    H2 = w2.shape[1]
    A = w3.shape[1]

    # Batch tile: large multiple of 8 (clamped for tiny batches); pad B so the
    # grid divides evenly and slice the padding off afterwards.
    TB = min(tb_max, _round_up(B, 8))
    B_pad = _round_up(B, TB)
    pad = B_pad - B

    obs_bf = obs.astype(jnp.bfloat16)
    if pad:
        obs_bf = jnp.pad(obs_bf, ((0, pad), (0, 0)))

    if act is None:
        act_arr = jnp.zeros((B_pad, 1), jnp.int32)
    else:
        act_arr = act.astype(jnp.int32).reshape(B, 1)
        if pad:
            act_arr = jnp.pad(act_arr, ((0, pad), (0, 0)))

    # bf16 weights: halves weight HBM traffic; they stay VMEM-resident across
    # the whole grid (index_map always (0, 0)).
    w1_bf = w1.astype(jnp.bfloat16)
    w2_bf = w2.astype(jnp.bfloat16)
    w3_bf = w3.astype(jnp.bfloat16)

    grid = (pl.cdiv(B_pad, TB),)

    logits_pad, logp_pad = pl.pallas_call(
        actor_kernel,
        out_shape=(
            jax.ShapeDtypeStruct((B_pad, A), jnp.float32),
            jax.ShapeDtypeStruct((B_pad, 1), jnp.float32),
        ),
        grid=grid,
        in_specs=[
            pl.BlockSpec((TB, D), lambda i: (i, 0)),    # obs tile (pipelined)
            pl.BlockSpec((TB, 1), lambda i: (i, 0)),    # act tile (pipelined)
            pl.BlockSpec((D, H1), lambda i: (0, 0)),    # w1 (resident)
            pl.BlockSpec((1, H1), lambda i: (0, 0)),    # b1
            pl.BlockSpec((H1, H2), lambda i: (0, 0)),   # w2
            pl.BlockSpec((1, H2), lambda i: (0, 0)),    # b2
            pl.BlockSpec((H2, A), lambda i: (0, 0)),    # w3
            pl.BlockSpec((1, A), lambda i: (0, 0)),     # b3
        ],
        out_specs=(
            pl.BlockSpec((TB, A), lambda i: (i, 0)),    # logits
            pl.BlockSpec((TB, 1), lambda i: (i, 0)),    # logp_a
        ),
        compiler_params=pltpu.CompilerParams(
            dimension_semantics=("parallel",)),
    )(obs_bf, act_arr, w1_bf, b1, w2_bf, b2, w3_bf, b3)

    logits = logits_pad[:B]
    logp_a = None if act is None else logp_pad[:B, 0]
    return logits, logp_a


def init_params(key, obs_dim, hidden_sizes, act_dim):
    """Deterministic synthetic init matching PyTorch Linear default ranges.

    Weights stored as (in, out); biases as (1, out) for lane-friendly layout.
    """
    sizes = [obs_dim] + list(hidden_sizes) + [act_dim]
    params = []
    for j in range(len(sizes) - 1):
        key, kw, kb = jax.random.split(key, 3)
        bound = 1.0 / jnp.sqrt(sizes[j])
        w = jax.random.uniform(kw, (sizes[j], sizes[j + 1]),
                               minval=-bound, maxval=bound, dtype=jnp.float32)
        b = jax.random.uniform(kb, (1, sizes[j + 1]),
                               minval=-bound, maxval=bound, dtype=jnp.float32)
        params.extend([w, b])
    return tuple(params)


def mlp_actor_reference(obs, params, act):
    """Pure-JAX reference mirroring the kernel's dtype choices exactly."""
    w1, b1, w2, b2, w3, b3 = params
    x = obs.astype(jnp.bfloat16)
    h1 = jnp.tanh(
        jnp.dot(x, w1.astype(jnp.bfloat16),
                preferred_element_type=jnp.float32) + b1)
    h2 = jnp.tanh(
        jnp.dot(h1, w2.astype(jnp.bfloat16).astype(jnp.float32),
                preferred_element_type=jnp.float32) + b2)
    logits = (jnp.dot(h2, w3.astype(jnp.bfloat16).astype(jnp.float32),
                      preferred_element_type=jnp.float32) + b3)
    logp = jax.nn.log_softmax(logits, axis=-1)
    logp_a = jnp.take_along_axis(logp, act.astype(jnp.int32)[:, None],
                                 axis=-1)[:, 0]
    return logits, logp_a


if __name__ == "__main__":
    key = jax.random.PRNGKey(0)

    B = 2            # batch of observations
    obs_dim = 16     # observation dimension
    act_dim = 6      # number of discrete actions
    hidden_sizes = (32, 32)
    # activation = tanh (standard choice for the PPO/VPG actor)

    key, k_obs, k_act, k_params = jax.random.split(key, 4)
    obs = jax.random.normal(k_obs, (B, obs_dim), dtype=jnp.float32)
    act = jax.random.randint(k_act, (B,), 0, act_dim, dtype=jnp.int32)
    params = init_params(k_params, obs_dim, hidden_sizes, act_dim)

    logits, logp_a = mlp_actor_forward(obs, params, act)
    logits = jax.block_until_ready(logits)
    logp_a = jax.block_until_ready(logp_a)

    logits_ref, logp_a_ref = mlp_actor_reference(obs, params, act)

    assert logits.shape == (B, act_dim), f"unexpected logits shape {logits.shape}"
    assert logp_a.shape == (B,), f"unexpected logp_a shape {logp_a.shape}"
    assert jnp.allclose(logits, logits_ref, atol=5e-4, rtol=5e-4), \
        "logits mismatch vs reference"
    assert jnp.allclose(logp_a, logp_a_ref, atol=5e-4, rtol=5e-4), \
        "logp_a mismatch vs reference"

    print("KERNEL_OK")
</pallas_src>

<mosaic_0001>
module attributes {stable_mosaic.version = 11 : i64} {
  func.func @actor_kernel(%arg0: i32, %arg1: memref<8x16xbf16, #tpu.memory_space<vmem>>, %arg2: memref<8x1xi32, #tpu.memory_space<vmem>>, %arg3: memref<16x32xbf16, #tpu.memory_space<vmem>>, %arg4: memref<1x32xf32, #tpu.memory_space<vmem>>, %arg5: memref<32x32xbf16, #tpu.memory_space<vmem>>, %arg6: memref<1x32xf32, #tpu.memory_space<vmem>>, %arg7: memref<32x6xbf16, #tpu.memory_space<vmem>>, %arg8: memref<1x6xf32, #tpu.memory_space<vmem>>, %arg9: memref<8x6xf32, #tpu.memory_space<vmem>>, %arg10: memref<8x1xf32, #tpu.memory_space<vmem>>) attributes {dimension_semantics = [#tpu.dimension_semantics<parallel>], iteration_bounds = array<i64: 1>, scalar_prefetch = 0 : i64, scratch_operands = 0 : i64, tpu.core_type = #tpu.core_type<tc>, window_params = [{transform_indices = @transform_0, window_bounds = array<i64: 8, 16>}, {transform_indices = @transform_1, window_bounds = array<i64: 8, 1>}, {pipeline_mode = #tpu.pipeline_mode<synchronous>, transform_indices = @transform_2, window_bounds = array<i64: 16, 32>}, {pipeline_mode = #tpu.pipeline_mode<synchronous>, transform_indices = @transform_3, window_bounds = array<i64: 1, 32>}, {pipeline_mode = #tpu.pipeline_mode<synchronous>, transform_indices = @transform_4, window_bounds = array<i64: 32, 32>}, {pipeline_mode = #tpu.pipeline_mode<synchronous>, transform_indices = @transform_5, window_bounds = array<i64: 1, 32>}, {pipeline_mode = #tpu.pipeline_mode<synchronous>, transform_indices = @transform_6, window_bounds = array<i64: 32, 6>}, {pipeline_mode = #tpu.pipeline_mode<synchronous>, transform_indices = @transform_7, window_bounds = array<i64: 1, 6>}, {transform_indices = @transform_8, window_bounds = array<i64: 8, 6>}, {transform_indices = @transform_9, window_bounds = array<i64: 8, 1>}]} {
    %c0 = arith.constant 0 : index
    %c0_0 = arith.constant 0 : index
    %0 = vector.load %arg1[%c0, %c0_0] : memref<8x16xbf16, #tpu.memory_space<vmem>>, vector<8x16xbf16>
    %c0_1 = arith.constant 0 : index
    %c0_2 = arith.constant 0 : index
    %1 = vector.load %arg3[%c0_1, %c0_2] : memref<16x32xbf16, #tpu.memory_space<vmem>>, vector<16x32xbf16>
    %cst = arith.constant dense<0.000000e+00> : vector<8x32xf32>
    %2 = tpu.matmul %0, %1, %cst {dimension_numbers = #tpu.dot_dimension_numbers<[1], [0], [0], [1], [0, 0, 1, 1], [], []>} : vector<8x16xbf16>, vector<16x32xbf16>, vector<8x32xf32> -> vector<8x32xf32>
    %c0_3 = arith.constant 0 : index
    %c0_4 = arith.constant 0 : index
    %3 = vector.load %arg4[%c0_3, %c0_4] : memref<1x32xf32, #tpu.memory_space<vmem>>, vector<1x32xf32>
    %4 = vector.broadcast %3 : vector<1x32xf32> to vector<8x32xf32>
    %5 = arith.addf %2, %4 : vector<8x32xf32>
    %6 = math.tanh %5 : vector<8x32xf32>
    %c0_5 = arith.constant 0 : index
    %c0_6 = arith.constant 0 : index
    %7 = vector.load %arg5[%c0_5, %c0_6] : memref<32x32xbf16, #tpu.memory_space<vmem>>, vector<32x32xbf16>
    %8 = arith.extf %7 : vector<32x32xbf16> to vector<32x32xf32>
    %cst_7 = arith.constant dense<0.000000e+00> : vector<8x32xf32>
    %9 = tpu.matmul %6, %8, %cst_7 {dimension_numbers = #tpu.dot_dimension_numbers<[1], [0], [0], [1], [0, 0, 1, 1], [], []>} : vector<8x32xf32>, vector<32x32xf32>, vector<8x32xf32> -> vector<8x32xf32>
    %c0_8 = arith.constant 0 : index
    %c0_9 = arith.constant 0 : index
    %10 = vector.load %arg6[%c0_8, %c0_9] : memref<1x32xf32, #tpu.memory_space<vmem>>, vector<1x32xf32>
    %11 = vector.broadcast %10 : vector<1x32xf32> to vector<8x32xf32>
    %12 = arith.addf %9, %11 : vector<8x32xf32>
    %13 = math.tanh %12 : vector<8x32xf32>
    %c0_10 = arith.constant 0 : index
    %c0_11 = arith.constant 0 : index
    %14 = vector.load %arg7[%c0_10, %c0_11] : memref<32x6xbf16, #tpu.memory_space<vmem>>, vector<32x6xbf16>
    %15 = arith.extf %14 : vector<32x6xbf16> to vector<32x6xf32>
    %cst_12 = arith.constant dense<0.000000e+00> : vector<8x6xf32>
    %16 = tpu.matmul %13, %15, %cst_12 {dimension_numbers = #tpu.dot_dimension_numbers<[1], [0], [0], [1], [0, 0, 1, 1], [], []>} : vector<8x32xf32>, vector<32x6xf32>, vector<8x6xf32> -> vector<8x6xf32>
    %c0_13 = arith.constant 0 : index
    %c0_14 = arith.constant 0 : index
    %17 = vector.load %arg8[%c0_13, %c0_14] : memref<1x6xf32, #tpu.memory_space<vmem>>, vector<1x6xf32>
    %18 = vector.broadcast %17 : vector<1x6xf32> to vector<8x6xf32>
    %19 = arith.addf %16, %18 : vector<8x6xf32>
    %c0_15 = arith.constant 0 : index
    %c0_16 = arith.constant 0 : index
    %20 = vector.load %arg9[%c0_15, %c0_16] : memref<8x6xf32, #tpu.memory_space<vmem>>, vector<8x6xf32>
    tpu.vector_store %arg9[%c0_15, %c0_16], %19 {strides = array<i32>} : memref<8x6xf32, #tpu.memory_space<vmem>>, vector<8x6xf32>,
    %cst_17 = arith.constant dense<0xFF800000> : vector<8xf32>
    %21 = vector.multi_reduction <maximumf>, %19, %cst_17 [1] : vector<8x6xf32> to vector<8xf32>
    %22 = vector.shape_cast %21 : vector<8xf32> to vector<8x1xf32>
    %23 = vector.broadcast %22 : vector<8x1xf32> to vector<8x6xf32>
    %24 = arith.subf %19, %23 : vector<8x6xf32>
    %25 = math.exp %24 : vector<8x6xf32>
    %cst_18 = arith.constant dense<0.000000e+00> : vector<8xf32>
    %26 = vector.multi_reduction <add>, %25, %cst_18 [1] : vector<8x6xf32> to vector<8xf32>
    %27 = vector.shape_cast %26 : vector<8xf32> to vector<8x1xf32>
    %28 = math.log %27 : vector<8x1xf32>
    %29 = vector.broadcast %28 : vector<8x1xf32> to vector<8x6xf32>
    %30 = arith.subf %24, %29 : vector<8x6xf32>
    %31 = tpu.iota {dimensions = array<i32: 1>} : vector<8x6xi32>
    %c0_19 = arith.constant 0 : index
    %c0_20 = arith.constant 0 : index
    %32 = vector.load %arg2[%c0_19, %c0_20] : memref<8x1xi32, #tpu.memory_space<vmem>>, vector<8x1xi32>
    %33 = vector.broadcast %32 : vector<8x1xi32> to vector<8x6xi32>
    %34 = arith.cmpi eq, %31, %33 : vector<8x6xi32>
    %35 = arith.extui %34 : vector<8x6xi1> to vector<8x6xi32>
    %36 = arith.sitofp %35 : vector<8x6xi32> to vector<8x6xf32>
    %37 = arith.mulf %30, %36 : vector<8x6xf32>
    %cst_21 = arith.constant dense<0.000000e+00> : vector<8xf32>
    %38 = vector.multi_reduction <add>, %37, %cst_21 [1] : vector<8x6xf32> to vector<8xf32>
    %39 = vector.shape_cast %38 : vector<8xf32> to vector<8x1xf32>
    %c0_22 = arith.constant 0 : index
    %c0_23 = arith.constant 0 : index
    %40 = vector.load %arg10[%c0_22, %c0_23] : memref<8x1xf32, #tpu.memory_space<vmem>>, vector<8x1xf32>
    tpu.vector_store %arg10[%c0_22, %c0_23], %39 {strides = array<i32>} : memref<8x1xf32, #tpu.memory_space<vmem>>, vector<8x1xf32>,
    return
  }
  func.func @transform_0(%arg0: i32) -> (i32, i32) {
    %c0_i32 = arith.constant 0 : i32
    %c0_i32_0 = arith.constant 0 : i32
    return %arg0, %c0_i32 : i32, i32
  }
  func.func @transform_1(%arg0: i32) -> (i32, i32) {
    %c0_i32 = arith.constant 0 : i32
    %c0_i32_0 = arith.constant 0 : i32
    return %arg0, %c0_i32 : i32, i32
  }
  func.func @transform_2(%arg0: i32) -> (i32, i32) {
    %c0_i32 = arith.constant 0 : i32
    %c0_i32_0 = arith.constant 0 : i32
    %c0_i32_1 = arith.constant 0 : i32
    return %c0_i32, %c0_i32_0 : i32, i32
  }
  func.func @transform_3(%arg0: i32) -> (i32, i32) {
    %c0_i32 = arith.constant 0 : i32
    %c0_i32_0 = arith.constant 0 : i32
    %c0_i32_1 = arith.constant 0 : i32
    return %c0_i32, %c0_i32_0 : i32, i32
  }
  func.func @transform_4(%arg0: i32) -> (i32, i32) {
    %c0_i32 = arith.constant 0 : i32
    %c0_i32_0 = arith.constant 0 : i32
    %c0_i32_1 = arith.constant 0 : i32
    return %c0_i32, %c0_i32_0 : i32, i32
  }
  func.func @transform_5(%arg0: i32) -> (i32, i32) {
    %c0_i32 = arith.constant 0 : i32
    %c0_i32_0 = arith.constant 0 : i32
    %c0_i32_1 = arith.constant 0 : i32
    return %c0_i32, %c0_i32_0 : i32, i32
  }
  func.func @transform_6(%arg0: i32) -> (i32, i32) {
    %c0_i32 = arith.constant 0 : i32
    %c0_i32_0 = arith.constant 0 : i32
    %c0_i32_1 = arith.constant 0 : i32
    return %c0_i32, %c0_i32_0 : i32, i32
  }
  func.func @transform_7(%arg0: i32) -> (i32, i32) {
    %c0_i32 = arith.constant 0 : i32
    %c0_i32_0 = arith.constant 0 : i32
    %c0_i32_1 = arith.constant 0 : i32
    return %c0_i32, %c0_i32_0 : i32, i32
  }
  func.func @transform_8(%arg0: i32) -> (i32, i32) {
    %c0_i32 = arith.constant 0 : i32
    %c0_i32_0 = arith.constant 0 : i32
    return %arg0, %c0_i32 : i32, i32
  }
  func.func @transform_9(%arg0: i32) -> (i32, i32) {
    %c0_i32 = arith.constant 0 : i32
    %c0_i32_0 = arith.constant 0 : i32
    return %arg0, %c0_i32 : i32, i32
  }
}

</mosaic_0001>

<bundles_post_ra>
// kernel: tpu_custom_call.1
= control target key start
LH: loop header
LB: loop body
LE: loop exit
PB: predicated region body
PF: predicated region fallthrough
CT: control target
= control target key end

     0   :  { %v437_v1 = vmov 0.0   ;;  %vm438_vm0 = vmmov 0   ;;  %vm49_vm1 = vcmask 130048   ;;  %s546_s0 = inlined_call_operand.vmem [shape: bf16[8,16], index: 0, kind: input, shape index: {}]   ;;  %s547_s1 = inlined_call_operand.vmem [shape: s32[8,1], index: 1, kind: input, shape index: {}]   ;;  %s548_s2 = inlined_call_operand.vmem [shape: bf16[16,32], index: 2, kind: input, shape index: {}]   ;;  %s549_s3 = inlined_call_operand.vmem [shape: f32[1,32], index: 3, kind: input, shape index: {}]   ;;  %s550_s4 = inlined_call_operand.vmem [shape: bf16[32,32], index: 4, kind: input, shape index: {}]   ;;  %s551_s5 = inlined_call_operand.vmem [shape: f32[1,32], index: 5, kind: input, shape index: {}]   ;;  %s552_s6 = inlined_call_operand.vmem [shape: bf16[32,6], index: 6, kind: input, shape index: {}]   ;;  %s553_s7 = inlined_call_operand.vmem [shape: f32[1,6], index: 7, kind: input, shape index: {}]   ;;  %s554_s8 = inlined_call_operand.hbm [shape: f32[8,6], index: 8, kind: output, shape index: {0}]   ;;  %s555_s9 = inlined_call_operand.vmem [shape: f32[8,1], index: 9, kind: output, shape index: {1}]  }
   0x1   :  { %v404_v0 = vld [vmem:[%s548_s2] sm:$0xff]   ;;  %357 = vmatprep.subr.bf16.mxu0 %v437_v1  ;;  %359 = vmatprep.mubr.msk.bf16.mxu0 %vm438_vm0, %v437_v1 }
   0x2   :  { %358 = vmatpush3.bf16.msra.mxu0 %v404_v0  ;;  %v33_v2 = vld [vmem:[%s546_s0] sm:$0xf] }
   0x3   :  { %15 = vsyncpa [#allocation3], 0  ;;  %371 = vmatprep.mubr.msk.f32.mxu1 %vm438_vm0, %v437_v1  ;;  %v328_v3 = vld [vmem:[%s550_s4] sm:$0xff]   ;;  %v439_v4 = vmov 0.0|0.0   ;;  %v343_v5 = vld [vmem:[%s550_s4 + $0x8] sm:$0xff]   ;;  %vm109_vm2 = vcmask 261120   ;;  %v286_v33 = vlaneseq }
   0x4   :  { %385 = vmatprep.subr.bf16.mxu1 %v439_v4  ;;  %391 = vmatprep.subr.bf16.mxu0 %v439_v4  ;;  %v319_v6 = vld [vmem:[%s549_s3] ss:$0 sm:$0xff]  ;;  %v344_v14 = vld [vmem:[%s552_s6 + $0x8] sm:$0xff]   ;;  %vm272_vm3 = vcmask 48128   ;;  %v440_v26 = vmov 0  }
   0x5   :  { %360 = vmatmul.mubr.msk.bf16.vlgmr.msra.gmra.mrb[0].mxu0 %vm49_vm1, %v33_v2  ;;  %387 = vmatpush3.bf16.msra.mxu1 %v328_v3  ;;  %v336_v13 = vld [vmem:[%s552_s6] sm:$0xff]   ;;  %v287_v34 = vand.u32 127, %v286_v33 }
   0x6   :  { %382 = vmatprep.mubr.msk.f32.mxu0 %vm438_vm0, %v437_v1  ;;  %388 = vmatprep.subr.bf16.mxu1 %v439_v4  ;;  %v322_v15 = vld [vmem:[%s551_s5] ss:$0 sm:$0xff] }
   0x7   :  { %393 = vmatpush3.bf16.msra.mxu0 %v336_v13  ;;  %v324_v20 = vld [vmem:[%s553_s7] ss:$0 sm:$0xff]  ;;  %402 = vset.pattern.permute.xlu1 %v440_v26 }
   0x8   :  { %394 = vmatprep.subr.bf16.mxu0 %v439_v4  ;;  %v288_v25 = vld [vmem:[%s547_s1] sm:$0xff]  ;;  %403 = vset.pattern.permute.xlu0 %v440_v26  ;;  %s441_s1 = smov [#allocation2]  }
   0x9   :  { %390 = vmatpush3.bf16.msra.mxu1 %v343_v5  ;;  %290 = vperm.xlu1 %402, %v288_v25   ;;  %s307_s7 = sshll.u32 %s441_s1, 4  ;;  %s308_s7 = int_to_ptr.vmem [resolvable:$true] %s307_s7 }
   0xa   :  { %s413_s23 = scalar_lea.vmem %s308_s7, 128  ;;  %p418_p1 = scmp.lt.s32.totalorder %s308_s7, %s308_s7 }
   0xb   :  { %396 = vmatpush3.bf16.msra.mxu0 %v344_v14  ;;  %p414_p0 = scmp.ne.s32.totalorder %s308_s7, %s413_s23  ;;  %p419_p2 = scmp.lt.s32.totalorder %s413_s23, %s413_s23 }
   0xd   :  { %p420_p3 = por %p419_p2, %p418_p1 }
   0xf   :  { %p421_p4 = pnand %p420_p3, %p414_p0 }
  0x88   :  { %v291_v35 = vpop.permute.xlu1 %290 }
  0x89   :  { %vm292_vm4 = vcmp.eq.s32.totalorder %v287_v34, %v291_v35 }
  0x8a   :  { %v326_v38 = vsel %vm292_vm4, 1.0, %v437_v1 }
  0xd8   :  { %v87_v7 = vpop.f32.mrb[0].mxu0 }
  0xd9   :  { %v88_v8 = vadd.f32 %v319_v6, %v87_v7  ;;  %v361_v9 = vpop.f32.mrb[1].mxu0 }
  0xda   :  { %v90_v10 = vpop.f32.mrb[2].mxu0 }
  0xdb   :  { %405 = vtanh.f32 %v88_v8  ;;  %v362_v11 = vpop.f32.mrb[3].mxu0 }
  0xe5   :  { %v406_v12 = vpop.eup %405 }
  0xe6   :  { %372 = vmatmul.mubr.msk.f32.vlgmr.msra.gmra.mrb[0].mxu1 %vm109_vm2, %v406_v12 }
 0x1b9   :  { %v179_v16 = vpop.f32.mrb[0].mxu1 }
 0x1ba   :  { %v180_v17 = vadd.f32 %v322_v15, %v179_v16  ;;  %v373_v18 = vpop.f32.mrb[1].mxu1 }
 0x1bc   :  { %407 = vtanh.f32 %v180_v17 }
 0x1c6   :  { %v408_v19 = vpop.eup %407 }
 0x1c7   :  { %383 = vmatmul.mubr.msk.f32.vlgmr.msra.gmra.mrb[4].mxu0 %vm109_vm2, %v408_v19 }
 0x29a   :  { %v268_v21 = vpop.f32.mrb[4].mxu0 }
 0x29b   :  { %v269_v22 = vadd.f32 %v324_v20, %v268_v21  ;;  %v384_v23 = vpop.f32.mrb[5].mxu0 }
 0x29d   :  { %v274_v24 = vsel %vm272_vm3, %v269_v22, -inf  ;;  %273 = vst.msk [vmem:[#allocation2] sm:$0xff] %vm272_vm3, %v269_v22 }
 0x29e   :  { %275 = vmax.xlane.f32.xlu0 %v274_v24 }
 0x32b   :  { %v276_v27 = vpop.xlane.xlu0 %275 }
 0x32c   :  { %v277_v28 = vsub.f32 %v269_v22, %v276_v27 }
 0x32e   :  { %v278_v29 = vmul.f32 1.442695, %v277_v28 }
 0x330   :  { %409 = vpow2.f32 %v278_v29 }
 0x33a   :  { %v410_v30 = vpop.eup %409 }
 0x33b   :  { %v280_v31 = vsel %vm272_vm3, %v410_v30, 0.0 }
 0x33c   :  { %281 = vadd.xlane.f32.xlu0 %v280_v31 }
 0x3c9   :  { %v282_v32 = vpop.xlane.xlu0 %281 }
 0x3ca   :  { %411 = vlog2.f32 %v282_v32 }
 0x3d4   :  { %v412_v36 = vpop.eup %411 }
 0x3d5   :  { %v284_v37 = vmul.f32 0.6931472, %v412_v36 }
 0x3d7   :  { %v285_v39 = vsub.f32 %v277_v28, %v284_v37 }
 0x3d9   :  { %v295_v40 = vmul.f32 %v326_v38, %v285_v39 }
 0x3db   :  { %v296_v41 = vsel %vm272_vm3, %v295_v40, 0.0 }
 0x3dc   :  { %297 = vadd.xlane.f32.xlu1 %v296_v41 }
 0x3dd   :  { %424 = shalt.err (!%p421_p4)
}
 0x3de   :  { %s425_s26 = scalar_lea.hbm %s554_s8, 128 }
 0x3df   :  { %p426_p5 = scmp.ne.s32.totalorder %s554_s8, %s425_s26  ;;  %p429_p6 = scmp.lt.u32.totalorder %s425_s26, %s554_s8 }
 0x3e1   :  { %p431_p7 = pnand %p429_p6, %p426_p5 }
 0x3e3   :  { %434 = shalt.err (!%p431_p7)
}
 0x3e4   :  { %310 = dma.vmem_to_hbm [thread:$0]  %s308_s7, 128, %s554_s8, [#allocation3]   ;;  %vm299_vm5 = vcmask 7168  }
 0x469   :  { %v298_v42 = vpop.xlane.xlu1 %297 }
 0x46a   :  { %300 = vst.msk [vmem:[%s555_s9] sm:$0xff] %vm299_vm5, %v298_v42 }
 0x46b   :  { %435 = dma.done.wait [#allocation3], 128  }
 0x46c   :  { %436 = vsyncadd [#allocation3], 4294967168 }
 0x46d   :  { %318 = vsyncpa [#allocation3], 1 }

</bundles_post_ra>
